<compile_context>
chip_gen: v7x
topology: tpu7x:2x2x1
jax: 0.10.0
libtpu: 0.0.40
codegen_flags: <defaults>
</compile_context>

<pallas_src>
import math
import functools

import jax
import jax.numpy as jnp
from jax.experimental import pallas as pl
from jax.experimental.pallas import tpu as pltpu


_LANES = 128
# (8192, 128) f32 tile = 4 MiB; 6 double-buffered tiles (q, v, out) = 24 MiB.
_MAX_TILE_ROWS = 8192


def _pack_factor(h):
    """How many original (B, H) rows are packed into one 128-lane row."""
    if h <= _LANES and _LANES % h == 0:
        return _LANES // h
    return 1


def _round_up(x, m):
    return ((x + m - 1) // m) * m


def _mha_kernel(q_ref, v_ref, wv_ref, bv_ref, o_ref):
    """out_tile = relu(values_tile @ Wv_bd + bv) + queries_tile (exact forward).

    One MXU matmul per batch tile; bias + ReLU + residual are one fused VPU
    pass; one unmasked, full-128-lane store per tile.
    """
    vproj = jnp.dot(v_ref[...], wv_ref[...],
                    preferred_element_type=jnp.float32)
    out = jnp.maximum(vproj + bv_ref[...], 0.0) + q_ref[...]
    o_ref[...] = out.astype(o_ref.dtype)


def prepare_params(params):
    """One-time parameter prep (kept out of the per-call path).

    Only the V projection survives the degenerate attention.  The (out,in)
    Linear weight is transposed to (in,out) and, when H divides 128, expanded
    to a 128x128 block-diagonal so the kernel can run on the lane-dense packed
    layout; the bias is tiled to match.  Numerically exact (extra terms are
    exact zeros).
    """
    h = params["wv"].shape[0]
    pack = _pack_factor(h)
    wv_t = jnp.asarray(params["wv"], dtype=jnp.float32).T          # (in, out)
    bv = jnp.asarray(params["bv"], dtype=jnp.float32)
    if pack > 1:
        wv_t = jnp.kron(jnp.eye(pack, dtype=jnp.float32), wv_t)    # block-diag
        bv = jnp.tile(bv, pack)
    return {"wv_t": wv_t, "bv": bv.reshape(1, h * pack)}


@functools.partial(jax.jit, static_argnames=("num_heads",))
def multi_head_attention(queries, keys, values, prepared, *, num_heads):
    """Pallas forward.  `keys` is accepted for interface fidelity but has no
    effect on the result (softmax over a length-1 key axis is exactly 1)."""
    del keys
    B, H = queries.shape
    assert H % num_heads == 0, "num_hiddens must be divisible by num_heads"

    pack = _pack_factor(H)
    L = H * pack
    assert prepared["wv_t"].shape == (L, L), "prepared params / H mismatch"

    # ---- lane-dense repack: (B, H) -> (Bp, 128), padding B to a multiple of
    # `pack` with zero rows (sliced off afterwards).  Row-major contiguity
    # makes the reshape a free relayout.
    Bpad = _round_up(B, pack)
    if Bpad != B:
        pad = Bpad - B
        queries = jnp.pad(queries, ((0, pad), (0, 0)))
        values = jnp.pad(values, ((0, pad), (0, 0)))
    Bp = Bpad // pack
    qp = queries.reshape(Bp, L)
    vp = values.reshape(Bp, L)

    # ---- tile choice: whole slab when small; otherwise multi-MiB tiles,
    # a multiple of 8 sublanes, capped for VMEM and split into >= 4 grid steps
    # so the "parallel" axis actually shards across v7x's two TensorCores.
    if Bp <= 1024:
        tb = Bp
    else:
        tb = min(_MAX_TILE_ROWS, _round_up(pl.cdiv(Bp, 4), 8))
    grid = (pl.cdiv(Bp, tb),)

    row_spec = pl.BlockSpec((tb, L), lambda i: (i, 0))

    # Explicit VMEM budget: 2x(q)+2x(v)+2x(out) tiles + resident weights/bias
    # + slack.  Clamped to [16 MiB, 48 MiB] — above v5e's 16 MiB scoped default,
    # below v7x's 64 MiB physical.
    vmem_limit = 6 * tb * L * 4 + 2 * (L * L + L) * 4 + (4 << 20)
    vmem_limit = int(min(max(vmem_limit, 16 << 20), 48 << 20))

    out_p = pl.pallas_call(
        _mha_kernel,
        out_shape=jax.ShapeDtypeStruct((Bp, L), jnp.float32),
        grid=grid,
        in_specs=[
            row_spec,                                 # queries (gridded over B)
            row_spec,                                 # values  (gridded over B)
            pl.BlockSpec((L, L), lambda i: (0, 0)),   # block-diag Wv^T (resident)
            pl.BlockSpec((1, L), lambda i: (0, 0)),   # bv (resident)
        ],
        out_specs=row_spec,
        compiler_params=pltpu.CompilerParams(
            dimension_semantics=("parallel",),        # megacore on v7x
            vmem_limit_bytes=vmem_limit,
        ),
    )(qp, vp, prepared["wv_t"], prepared["bv"])

    out = out_p.reshape(Bpad, H)
    return out[:B] if Bpad != B else out


def _reference(queries, keys, values, params, *, num_heads):
    """Pure-JAX transcription of the full PyTorch forward (incl. the
    degenerate softmax), used to validate the simplified kernel."""
    B, H = queries.shape
    d = H // num_heads
    q = jax.nn.relu(queries @ params["wq"].T + params["bq"])
    k = jax.nn.relu(keys @ params["wk"].T + params["bk"])
    v = jax.nn.relu(values @ params["wv"].T + params["bv"])
    qs = q.reshape(B, num_heads, 1, d)
    ks = k.reshape(B, num_heads, 1, d)
    vs = v.reshape(B, num_heads, 1, d)
    score = jnp.einsum("bhqd,bhkd->bhqk", qs, ks) / math.sqrt(d)
    score = jax.nn.softmax(score, axis=-1)
    a = jnp.einsum("bhqk,bhkd->bhqd", score, vs)          # (B, nh, 1, d)
    a = jnp.transpose(a, (0, 1, 3, 2)).reshape(B, H)      # permute + reshape
    return a + queries


if __name__ == "__main__":
    num_hiddens = 32
    num_heads = 4

    key = jax.random.PRNGKey(0)
    kq, kk, kv, k1, k2, k3, k4, k5, k6 = jax.random.split(key, 9)

    # Deterministic nn.Linear-style init: U(-1/sqrt(H), 1/sqrt(H)).
    bound = 1.0 / math.sqrt(num_hiddens)
    params = {
        "wq": jax.random.uniform(k1, (num_hiddens, num_hiddens),
                                 minval=-bound, maxval=bound, dtype=jnp.float32),
        "bq": jax.random.uniform(k2, (num_hiddens,),
                                 minval=-bound, maxval=bound, dtype=jnp.float32),
        "wk": jax.random.uniform(k3, (num_hiddens, num_hiddens),
                                 minval=-bound, maxval=bound, dtype=jnp.float32),
        "bk": jax.random.uniform(k4, (num_hiddens,),
                                 minval=-bound, maxval=bound, dtype=jnp.float32),
        "wv": jax.random.uniform(k5, (num_hiddens, num_hiddens),
                                 minval=-bound, maxval=bound, dtype=jnp.float32),
        "bv": jax.random.uniform(k6, (num_hiddens,),
                                 minval=-bound, maxval=bound, dtype=jnp.float32),
    }

    # One-time parameter prep (transpose / block-diag / bias tile, once per model).
    prepared = prepare_params(params)

    ok = True
    # B=8: pack-aligned case.  B=37: exercises zero-padding + slice-back.
    for B in (8, 37):
        kq2, kk2, kv2 = jax.random.split(jax.random.fold_in(key, B), 3)
        queries = jax.random.normal(kq2, (B, num_hiddens), dtype=jnp.float32)
        keys_in = jax.random.normal(kk2, (B, num_hiddens), dtype=jnp.float32)
        values = jax.random.normal(kv2, (B, num_hiddens), dtype=jnp.float32)

        out = multi_head_attention(queries, keys_in, values, prepared,
                                   num_heads=num_heads)
        out = jax.block_until_ready(out)

        ref = _reference(queries, keys_in, values, params, num_heads=num_heads)
        ok &= out.shape == (B, num_hiddens)
        ok &= bool(jnp.allclose(out, ref, atol=1e-5, rtol=1e-5))

    assert ok, "mismatch vs reference"
    print("KERNEL_OK")
</pallas_src>

<mosaic_0001>
module attributes {stable_mosaic.version = 11 : i64} {
  func.func @_mha_kernel(%arg0: i32, %arg1: memref<2x128xf32, #tpu.memory_space<vmem>>, %arg2: memref<2x128xf32, #tpu.memory_space<vmem>>, %arg3: memref<128x128xf32, #tpu.memory_space<vmem>>, %arg4: memref<1x128xf32, #tpu.memory_space<vmem>>, %arg5: memref<2x128xf32, #tpu.memory_space<vmem>>) attributes {dimension_semantics = [#tpu.dimension_semantics<parallel>], iteration_bounds = array<i64: 1>, scalar_prefetch = 0 : i64, scratch_operands = 0 : i64, tpu.core_type = #tpu.core_type<tc>, window_params = [{transform_indices = @transform_0, window_bounds = array<i64: 2, 128>}, {transform_indices = @transform_1, window_bounds = array<i64: 2, 128>}, {pipeline_mode = #tpu.pipeline_mode<synchronous>, transform_indices = @transform_2, window_bounds = array<i64: 128, 128>}, {pipeline_mode = #tpu.pipeline_mode<synchronous>, transform_indices = @transform_3, window_bounds = array<i64: 1, 128>}, {transform_indices = @transform_4, window_bounds = array<i64: 2, 128>}]} {
    %c0 = arith.constant 0 : index
    %c0_0 = arith.constant 0 : index
    %0 = vector.load %arg2[%c0, %c0_0] : memref<2x128xf32, #tpu.memory_space<vmem>>, vector<2x128xf32>
    %c0_1 = arith.constant 0 : index
    %c0_2 = arith.constant 0 : index
    %1 = vector.load %arg3[%c0_1, %c0_2] : memref<128x128xf32, #tpu.memory_space<vmem>>, vector<128x128xf32>
    %cst = arith.constant dense<0.000000e+00> : vector<2x128xf32>
    %2 = tpu.matmul %0, %1, %cst {dimension_numbers = #tpu.dot_dimension_numbers<[1], [0], [0], [1], [0, 0, 1, 1], [], []>} : vector<2x128xf32>, vector<128x128xf32>, vector<2x128xf32> -> vector<2x128xf32>
    %c0_3 = arith.constant 0 : index
    %c0_4 = arith.constant 0 : index
    %3 = vector.load %arg4[%c0_3, %c0_4] : memref<1x128xf32, #tpu.memory_space<vmem>>, vector<1x128xf32>
    %4 = vector.broadcast %3 : vector<1x128xf32> to vector<2x128xf32>
    %5 = arith.addf %2, %4 : vector<2x128xf32>
    %cst_5 = arith.constant 0.000000e+00 : f32
    %6 = vector.broadcast %cst_5 : f32 to vector<2x128xf32>
    %7 = arith.maximumf %5, %6 : vector<2x128xf32>
    %c0_6 = arith.constant 0 : index
    %c0_7 = arith.constant 0 : index
    %8 = vector.load %arg1[%c0_6, %c0_7] : memref<2x128xf32, #tpu.memory_space<vmem>>, vector<2x128xf32>
    %9 = arith.addf %7, %8 : vector<2x128xf32>
    %c0_8 = arith.constant 0 : index
    %c0_9 = arith.constant 0 : index
    %10 = vector.load %arg5[%c0_8, %c0_9] : memref<2x128xf32, #tpu.memory_space<vmem>>, vector<2x128xf32>
    tpu.vector_store %arg5[%c0_8, %c0_9], %9 {strides = array<i32>} : memref<2x128xf32, #tpu.memory_space<vmem>>, vector<2x128xf32>,
    return
  }
  func.func @transform_0(%arg0: i32) -> (i32, i32) {
    %c0_i32 = arith.constant 0 : i32
    %c0_i32_0 = arith.constant 0 : i32
    return %arg0, %c0_i32 : i32, i32
  }
  func.func @transform_1(%arg0: i32) -> (i32, i32) {
    %c0_i32 = arith.constant 0 : i32
    %c0_i32_0 = arith.constant 0 : i32
    return %arg0, %c0_i32 : i32, i32
  }
  func.func @transform_2(%arg0: i32) -> (i32, i32) {
    %c0_i32 = arith.constant 0 : i32
    %c0_i32_0 = arith.constant 0 : i32
    %c0_i32_1 = arith.constant 0 : i32
    return %c0_i32, %c0_i32_0 : i32, i32
  }
  func.func @transform_3(%arg0: i32) -> (i32, i32) {
    %c0_i32 = arith.constant 0 : i32
    %c0_i32_0 = arith.constant 0 : i32
    %c0_i32_1 = arith.constant 0 : i32
    return %c0_i32, %c0_i32_0 : i32, i32
  }
  func.func @transform_4(%arg0: i32) -> (i32, i32) {
    %c0_i32 = arith.constant 0 : i32
    %c0_i32_0 = arith.constant 0 : i32
    return %arg0, %c0_i32 : i32, i32
  }
}

</mosaic_0001>

<bundles_post_ra>
// kernel: multi_head_attention.1
= control target key start
LH: loop header
LB: loop body
LE: loop exit
PB: predicated region body
PF: predicated region fallthrough
CT: control target
= control target key end

     0   :  { %9 = vsyncpa [#allocation3], 0  ;;  %s241_s15 = smov [#allocation2]   ;;  %s296_s0 = inlined_call_operand.vmem [shape: f32[2,128], index: 0, kind: input, shape index: {}]   ;;  %s297_s1 = inlined_call_operand.vmem [shape: f32[2,128], index: 1, kind: input, shape index: {}]   ;;  %s298_s2 = inlined_call_operand.hbm [shape: f32[128,128], index: 2, kind: input, shape index: {}]   ;;  %s299_s3 = inlined_call_operand.vmem [shape: f32[1,128], index: 3, kind: input, shape index: {}]   ;;  %s300_s4 = inlined_call_operand.vmem [shape: f32[2,128], index: 4, kind: output, shape index: {}]  }
   0x1   :  { %s19_s16 = sshll.u32 %s241_s15, 4  ;;  %s217_s19 = scalar_lea.hbm %s298_s2, 2048  ;;  %s20_s16 = int_to_ptr.vmem [resolvable:$true] %s19_s16 }
   0x2   :  { %p218_p0 = scmp.ne.s32.totalorder %s298_s2, %s217_s19  ;;  %p221_p1 = scmp.lt.u32.totalorder %s217_s19, %s298_s2 }
   0x4   :  { %p223_p2 = pnand %p221_p1, %p218_p0 }
   0x6   :  { %226 = shalt.err (!%p223_p2)
}
   0x7   :  { %s227_s24 = scalar_lea.vmem %s20_s16, 2048  ;;  %p232_p4 = scmp.lt.s32.totalorder %s20_s16, %s20_s16 }
   0x8   :  { %p228_p3 = scmp.ne.s32.totalorder %s20_s16, %s227_s24  ;;  %p233_p5 = scmp.lt.s32.totalorder %s227_s24, %s227_s24 }
   0xa   :  { %p234_p6 = por %p233_p5, %p232_p4 }
   0xc   :  { %p235_p7 = pnand %p234_p6, %p228_p3 }
   0xe   :  { %238 = shalt.err (!%p235_p7)
}
   0xf   :  { %s242_s25 = smov 128   ;;  %s243_s26 = smov 8  }
  0x10   :  { %25 = dma.hbm_to_vmem [thread:$0]  %s298_s2, 2048, %s20_s16, [#allocation3], %s242_s25, %s242_s25, %s243_s26  }
  0x11   :  { %239 = dma.done.wait [#allocation3], 2048  }
  0x12   :  { %240 = vsyncadd [#allocation3], 4294965248  ;;  %v244_v0 = vmov 0.0|0.0   ;;  %vm245_vm0 = vmmov 0   ;;  %v246_v1 = vmov 0.0   ;;  %v32_v2 = vld [vmem:[#allocation2] sm:$0xff] }
  0x13   :  { %187 = vmatprep.subr.bf16.mxu0 %v244_v0  ;;  %184 = vmatprep.mubr.msk.f32.mxu0 %vm245_vm0, %v246_v1  ;;  %v33_v3 = vld [vmem:[#allocation2 + $0x8] sm:$0xff]  ;;  %v34_v4 = vld [vmem:[#allocation2 + $0x10] sm:$0xff]  ;;  %v35_v6 = vld [vmem:[#allocation2 + $0x18] sm:$0xff] }
  0x14   :  { %v188_v5 = vpack.c.bf16 %v33_v3, %v32_v2  ;;  %v191_v7 = vpack.c.bf16 %v35_v6, %v34_v4  ;;  %v36_v8 = vld [vmem:[#allocation2 + $0x20] sm:$0xff]  ;;  %v37_v9 = vld [vmem:[#allocation2 + $0x28] sm:$0xff]  ;;  %v38_v11 = vld [vmem:[#allocation2 + $0x30] sm:$0xff] }
  0x15   :  { %v194_v10 = vpack.c.bf16 %v37_v9, %v36_v8  ;;  %v39_v12 = vld [vmem:[#allocation2 + $0x38] sm:$0xff]  ;;  %v40_v14 = vld [vmem:[#allocation2 + $0x40] sm:$0xff]  ;;  %v41_v15 = vld [vmem:[#allocation2 + $0x48] sm:$0xff] }
  0x16   :  { %189 = vmatpush3.bf16.msra.mxu0 %v188_v5  ;;  %v197_v13 = vpack.c.bf16 %v39_v12, %v38_v11  ;;  %v200_v16 = vpack.c.bf16 %v41_v15, %v40_v14  ;;  %v42_v17 = vld [vmem:[#allocation2 + $0x50] sm:$0xff]  ;;  %v43_v18 = vld [vmem:[#allocation2 + $0x58] sm:$0xff]  ;;  %v44_v20 = vld [vmem:[#allocation2 + $0x60] sm:$0xff] }
  0x17   :  { %190 = vmatprep.subr.bf16.mxu0 %v244_v0  ;;  %v203_v19 = vpack.c.bf16 %v43_v18, %v42_v17  ;;  %v45_v21 = vld [vmem:[#allocation2 + $0x68] sm:$0xff]  ;;  %v46_v23 = vld [vmem:[#allocation2 + $0x70] sm:$0xff]  ;;  %v47_v24 = vld [vmem:[#allocation2 + $0x78] sm:$0xff] }
  0x18   :  { %v206_v22 = vpack.c.bf16 %v45_v21, %v44_v20  ;;  %v209_v25 = vpack.c.bf16 %v47_v24, %v46_v23  ;;  %v31_v26 = vld [vmem:[%s297_s1] sm:$0x3] }
  0x19   :  { %v134_v27 = vld [vmem:[%s299_s3] ss:$0 sm:$0xff] }
  0x1a   :  { %192 = vmatpush3.bf16.msra.mxu0 %v191_v7  ;;  %v126_v31 = vld [vmem:[%s296_s0] sm:$0x3] }
  0x1b   :  { %193 = vmatprep.subr.bf16.mxu0 %v244_v0 }
  0x1e   :  { %195 = vmatpush3.bf16.msra.mxu0 %v194_v10 }
  0x1f   :  { %196 = vmatprep.subr.bf16.mxu0 %v244_v0 }
  0x22   :  { %198 = vmatpush3.bf16.msra.mxu0 %v197_v13 }
  0x23   :  { %199 = vmatprep.subr.bf16.mxu0 %v244_v0 }
  0x26   :  { %201 = vmatpush3.bf16.msra.mxu0 %v200_v16 }
  0x27   :  { %202 = vmatprep.subr.bf16.mxu0 %v244_v0 }
  0x2a   :  { %204 = vmatpush3.bf16.msra.mxu0 %v203_v19 }
  0x2b   :  { %205 = vmatprep.subr.bf16.mxu0 %v244_v0 }
  0x2e   :  { %207 = vmatpush3.bf16.msra.mxu0 %v206_v22 }
  0x2f   :  { %208 = vmatprep.subr.bf16.mxu0 %v244_v0 }
  0x32   :  { %210 = vmatpush3.bf16.msra.mxu0 %v209_v25 }
  0x35   :  { %185 = vmatmul.mubr.f32.vlgmr.msra.gmra.mrb[0].mxu0 %v31_v26 }
 0x108   :  { %v121_v28 = vpop.f32.mrb[0].mxu0 }
 0x109   :  { %v122_v29 = vadd.f32 %v134_v27, %v121_v28  ;;  %v186_v30 = vpop.f32.mrb[1].mxu0 }
 0x10b   :  { %v125_v32 = vmax.f32 %v122_v29, 0.0 }
 0x10d   :  { %v127_v33 = vadd.f32 %v126_v31, %v125_v32 }
 0x10f   :  { %128 = vst [vmem:[%s300_s4] sm:$0x3] %v127_v33 }
 0x110   :  { %133 = vsyncpa [#allocation3], 1 }

</bundles_post_ra>
